<compile_context>
chip_gen: v7x
topology: tpu7x:2x2x1
jax: 0.10.0
libtpu: 0.0.40
codegen_flags: <defaults>
</compile_context>

<pallas_src>
import jax
import jax.numpy as jnp
from jax.experimental import pallas as pl
from jax.experimental.pallas import tpu as pltpu


def _conv_mm_kernel(p_ref, w_ref, b_ref, o_ref):
    """One grid step: one batch element x one spatial tile.

    p_ref : (1, 9*Cin, TN)  im2col patches (contraction x spatial-lanes)
    w_ref : (Cout, 9*Cin)   flattened conv weights (tap-major K)
    b_ref : (Cout, 1)       bias (broadcast along lanes)
    o_ref : (1, Cout, TN)   lane-dense conv output tile
    """
    acc = jnp.dot(w_ref[...], p_ref[0], preferred_element_type=jnp.float32)
    o_ref[0] = (acc + b_ref[...]).astype(o_ref.dtype)


def conv3x3_pallas(x_nchw, weight, bias):
    """Conv2d(kernel=3, stride=1, padding=1, bias=True), NCHW in / NCHW out."""
    B, Cin, H, W = x_nchw.shape
    Cout = weight.shape[0]
    HW = H * W

    # ---- plain-JAX glue: zero pad + tap-major im2col + weight re-layout ----
    x_pad = jnp.pad(x_nchw, ((0, 0), (0, 0), (1, 1), (1, 1)))  # (B,Cin,H+2,W+2)
    cols = []
    for dh in range(3):
        for dw in range(3):
            cols.append(
                x_pad[:, :, dh:dh + H, dw:dw + W].reshape(B, Cin, HW))
    patches = jnp.concatenate(cols, axis=1)            # (B, 9*Cin, H*W)
    # PyTorch weight (Cout, Cin, kh, kw) -> (Cout, kh, kw, Cin) -> (Cout, 9*Cin)
    # (tap-major K, matching the im2col ordering above).
    w_flat = jnp.transpose(weight, (0, 2, 3, 1)).reshape(Cout, 9 * Cin)
    b_col = bias.reshape(Cout, 1)

    # Spatial tiling of the lane axis (keeps VMEM bounded for big H*W).
    if HW > 512 and HW % 512 == 0:
        tile_n = 512
    else:
        tile_n = HW                                    # full extent is allowed
    n_tiles = HW // tile_n

    out = pl.pallas_call(
        _conv_mm_kernel,
        out_shape=jax.ShapeDtypeStruct((B, Cout, HW), x_nchw.dtype),
        grid_spec=pltpu.PrefetchScalarGridSpec(
            num_scalar_prefetch=0,
            grid=(B, n_tiles),
            in_specs=[
                pl.BlockSpec((1, 9 * Cin, tile_n), lambda b, t: (b, 0, t)),
                pl.BlockSpec((Cout, 9 * Cin), lambda b, t: (0, 0)),
                pl.BlockSpec((Cout, 1), lambda b, t: (0, 0)),
            ],
            out_specs=pl.BlockSpec((1, Cout, tile_n), lambda b, t: (b, 0, t)),
        ),
        compiler_params=pltpu.CompilerParams(
            dimension_semantics=("parallel", "parallel"),
            vmem_limit_bytes=32 * 1024 * 1024),
    )(patches, w_flat, b_col)

    return out.reshape(B, Cout, H, W)


def pixel_shuffle_nchw(y, upscale_factor):
    """torch.nn.PixelShuffle(r) on NCHW input."""
    r = upscale_factor
    B, Ctot, H, W = y.shape
    C = Ctot // (r * r)
    y = y.reshape(B, C, r, r, H, W)               # (b, c, i, j, h, w)
    y = jnp.transpose(y, (0, 1, 4, 2, 5, 3))      # (b, c, h, i, w, j)
    return y.reshape(B, C, H * r, W * r)


def pixelshuffle_block_forward(x_nchw, weight, bias, upscale_factor):
    y = conv3x3_pallas(x_nchw, weight, bias)
    return pixel_shuffle_nchw(y, upscale_factor)


def _reference_forward(x_nchw, weight, bias, upscale_factor):
    """Pure-JAX reference (lax conv) matching the PyTorch module."""
    y = jax.lax.conv_general_dilated(
        x_nchw, weight, window_strides=(1, 1), padding="SAME",
        dimension_numbers=("NCHW", "OIHW", "NCHW"))
    y = y + bias[None, :, None, None]
    return pixel_shuffle_nchw(y, upscale_factor)


if __name__ == "__main__":
    # Module config (small, consistent with the forward pass):
    B, in_channels, H, W = 2, 4, 16, 16
    out_channels, upscale_factor = 4, 2
    conv_out = out_channels * upscale_factor ** 2  # 16

    key = jax.random.PRNGKey(0)
    kx, kw, kb = jax.random.split(key, 3)
    x = jax.random.normal(kx, (B, in_channels, H, W), dtype=jnp.float32)
    weight = jax.random.normal(kw, (conv_out, in_channels, 3, 3),
                               dtype=jnp.float32) * 0.1
    bias = jax.random.normal(kb, (conv_out,), dtype=jnp.float32) * 0.1

    out = pixelshuffle_block_forward(x, weight, bias, upscale_factor)
    out = jax.block_until_ready(out)

    ref = jax.block_until_ready(
        _reference_forward(x, weight, bias, upscale_factor))

    assert out.shape == (B, out_channels, H * upscale_factor, W * upscale_factor)
    assert jnp.allclose(out, ref, atol=1e-4, rtol=1e-4)

    print("KERNEL_OK")
</pallas_src>

<mosaic_0001>
module attributes {stable_mosaic.version = 11 : i64} {
  func.func @_conv_mm_kernel(%arg0: i32, %arg1: i32, %arg2: memref<1x36x256xf32, #tpu.memory_space<vmem>>, %arg3: memref<16x36xf32, #tpu.memory_space<vmem>>, %arg4: memref<16x1xf32, #tpu.memory_space<vmem>>, %arg5: memref<1x16x256xf32, #tpu.memory_space<vmem>>) attributes {dimension_semantics = [#tpu.dimension_semantics<parallel>, #tpu.dimension_semantics<parallel>], iteration_bounds = array<i64: 2, 1>, scalar_prefetch = 0 : i64, scratch_operands = 0 : i64, tpu.core_type = #tpu.core_type<tc>, window_params = [{transform_indices = @transform_0, window_bounds = array<i64: 1, 36, 256>}, {pipeline_mode = #tpu.pipeline_mode<synchronous>, transform_indices = @transform_1, window_bounds = array<i64: 16, 36>}, {pipeline_mode = #tpu.pipeline_mode<synchronous>, transform_indices = @transform_2, window_bounds = array<i64: 16, 1>}, {transform_indices = @transform_3, window_bounds = array<i64: 1, 16, 256>}]} {
    %c0 = arith.constant 0 : index
    %c0_0 = arith.constant 0 : index
    %0 = vector.load %arg3[%c0, %c0_0] : memref<16x36xf32, #tpu.memory_space<vmem>>, vector<16x36xf32>
    %c0_1 = arith.constant 0 : index
    %c0_2 = arith.constant 0 : index
    %c0_3 = arith.constant 0 : index
    %1 = vector.load %arg2[%c0_1, %c0_2, %c0_3] : memref<1x36x256xf32, #tpu.memory_space<vmem>>, vector<1x36x256xf32>
    %2 = vector.shape_cast %1 : vector<1x36x256xf32> to vector<36x256xf32>
    %cst = arith.constant dense<0.000000e+00> : vector<16x256xf32>
    %3 = tpu.matmul %0, %2, %cst {dimension_numbers = #tpu.dot_dimension_numbers<[1], [0], [0], [1], [0, 0, 1, 1], [], []>} : vector<16x36xf32>, vector<36x256xf32>, vector<16x256xf32> -> vector<16x256xf32>
    %c0_4 = arith.constant 0 : index
    %c0_5 = arith.constant 0 : index
    %4 = vector.load %arg4[%c0_4, %c0_5] : memref<16x1xf32, #tpu.memory_space<vmem>>, vector<16x1xf32>
    %5 = vector.broadcast %4 : vector<16x1xf32> to vector<16x256xf32>
    %6 = arith.addf %3, %5 : vector<16x256xf32>
    %c0_6 = arith.constant 0 : index
    %c0_7 = arith.constant 0 : index
    %c0_8 = arith.constant 0 : index
    %7 = vector.load %arg5[%c0_6, %c0_7, %c0_8] : memref<1x16x256xf32, #tpu.memory_space<vmem>>, vector<1x16x256xf32>
    %8 = vector.shape_cast %7 : vector<1x16x256xf32> to vector<16x256xf32>
    %9 = vector.shape_cast %6 : vector<16x256xf32> to vector<1x16x256xf32>
    tpu.vector_store %arg5[%c0_6, %c0_7, %c0_8], %9 {strides = array<i32>} : memref<1x16x256xf32, #tpu.memory_space<vmem>>, vector<1x16x256xf32>,
    return
  }
  func.func @transform_0(%arg0: i32, %arg1: i32) -> (i32, i32, i32) {
    %c0_i32 = arith.constant 0 : i32
    %c0_i32_0 = arith.constant 0 : i32
    return %arg0, %c0_i32, %arg1 : i32, i32, i32
  }
  func.func @transform_1(%arg0: i32, %arg1: i32) -> (i32, i32) {
    %c0_i32 = arith.constant 0 : i32
    %c0_i32_0 = arith.constant 0 : i32
    %c0_i32_1 = arith.constant 0 : i32
    return %c0_i32, %c0_i32_0 : i32, i32
  }
  func.func @transform_2(%arg0: i32, %arg1: i32) -> (i32, i32) {
    %c0_i32 = arith.constant 0 : i32
    %c0_i32_0 = arith.constant 0 : i32
    %c0_i32_1 = arith.constant 0 : i32
    return %c0_i32, %c0_i32_0 : i32, i32
  }
  func.func @transform_3(%arg0: i32, %arg1: i32) -> (i32, i32, i32) {
    %c0_i32 = arith.constant 0 : i32
    %c0_i32_0 = arith.constant 0 : i32
    return %arg0, %c0_i32, %arg1 : i32, i32, i32
  }
}

</mosaic_0001>

<bundles_post_ra>
// kernel: tpu_custom_call.1
= control target key start
LH: loop header
LB: loop body
LE: loop exit
PB: predicated region body
PF: predicated region fallthrough
CT: control target
= control target key end

     0   :  { %8 = vsyncpa [#allocation3], 0  ;;  %s738_s0 = inlined_call_operand.vmem [shape: f32[2,36,256], index: 0, kind: input, shape index: {}]   ;;  %s739_s1 = inlined_call_operand.vmem [shape: f32[16,36], index: 1, kind: input, shape index: {}]   ;;  %s740_s2 = inlined_call_operand.vmem [shape: f32[16,1], index: 2, kind: input, shape index: {}]   ;;  %s741_s3 = inlined_call_operand.hbm [shape: f32[2,16,256], index: 3, kind: output, shape index: {}]  }
   0x1   :  { %10 = vsyncpa [#allocation3 + $0x1], 0  ;;  %s611_s12 = smov 0   ;;  %s613_s13 = smov 0  }
   0x2   :  { %s615_s14 = smov 0   ;;  %s617_s15 = smov 0  }
   0x3   :  { %s619_s16 = smov 0   ;;  %s621_s17 = smov 0  }
   0x4 LB: > { %s414_s18 = sadd.s32 4294967295, %s584_s17   ;;  %s415_s19 = sadd.s32 4294967294, %s584_s17   ;;  %s584_s17 = sphi %s621_s17, %s16_s17   ;;  %s580_s16 = sphi %s619_s16, %s748_s16   ;;  %s576_s15 = sphi %s617_s15, %s747_s15   ;;  %s572_s14 = sphi %s615_s14, %s746_s14   ;;  %s568_s13 = sphi %s613_s13, %s745_s13   ;;  %s564_s12 = sphi %s611_s12, %s744_s12  }
   0x5   : > { %s28_s20 = sadd.s32 1, %s580_s16  ;;  %s107_s21 = sadd.s32 1, %s572_s14 }
   0x6   : > { %p30_p0 = scmp.ge.s32.totalorder %s28_s20, 2  ;;  %p117_p1 = scmp.ne.s32.totalorder %s572_s14, %s568_s13 }
   0x7   : > { %p118_p2 = scmp.eq.s32.totalorder %s414_s18, 1  ;;  %p123_p3 = scmp.ne.s32.totalorder %s568_s13, %s564_s12 }
   0x8   : > { %s750_s20 = smov (%p30_p0, %s28_s20), 0  ;;  %p124_p5 = scmp.eq.s32.totalorder %s415_s19, 1 }
   0x9   : > { %p651_p4 = por %p118_p2, %p117_p1  ;;  %s102_s23 = ssub.s32 %s580_s16, %s750_s20 }
   0xa   : > { %p418_p6 = scmp.ge.s32.totalorder %s584_s17, 1  ;;  %p105_p7 = scmp.eq.s32.totalorder %s102_s23, 0 }
   0xb   : > { %p658_p8 = por %p124_p5, %p123_p3  ;;  %p161_p9 = scmp.lt.s32.totalorder %s584_s17, 3 }
   0xc   : > { %s664_s25 = scalar_select %p105_p7, %s572_s14, %s107_s21  }
   0xd   : > { %p162_p10 = pnand %p418_p6, %p161_p9 }
   0xe   : > { %p190_p11 = scmp.lt.s32.totalorder (!%p162_p10), %s576_s15, 1  ;;  %v586_v0 = vmov (!%p162_p10), 0.0   ;;  %v212_v1 = vld [vmem:[%s740_s2] sm:$0xff] (!%p162_p10)  ;;  %v587_v2 = vmov (!%p162_p10), 0   ;;  %v213_v3 = vld [vmem:[%s740_s2 + $0x8] sm:$0xff] (!%p162_p10)  ;;  %vm231_vm0 = vcmask (!%p162_p10), 1043456  }
   0xf   : > { %165 = sbr.rel (%p162_p10) target bundleno = 270 (0x10e), region = 32  ;;  %302 = vmatprep.mubr.f32.mxu0 (!%p162_p10), %v586_v0  ;;  %308 = vmatprep.mubr.f32.mxu1 (!%p162_p10), %v586_v0  ;;  %v200_v18 = vld [vmem:[%s739_s1] sm:$0xff] (!%p162_p10)  ;;  %vm224_vm1 = vcmask (!%p162_p10), 293888   ;;  %v201_v19 = vld [vmem:[%s739_s1 + $0x8] sm:$0xff] (!%p162_p10)  ;;  %s186_s18 = sand.u32 (!%p162_p10), 1, %s568_s13  }
  0x10   : > { %505 = vset.pattern.permute.xlu0 (!%p162_p10), %v587_v2  ;;  %s419_s19 = sshll.u32 (!%p162_p10), %s186_s18, 5  ;;  %s430_s26 = sshll.u32 (!%p162_p10), %s576_s15, 9 }
  0x11   : > { %216 = vperm.xlu0 (!%p162_p10), %505, %v212_v1   ;;  %s188_s21 = scalar_lea.vmem (!%p162_p10), [#allocation2], %s419_s19  ;;  %s588_s4 = smov (!%p162_p10), [#allocation2]  }
  0x12   : > { %s335_s23 = sshll.u32 (!%p162_p10), %s188_s21, 4  ;;  %s510_s5 = sshll.u32 (!%p162_p10), %s588_s4, 4  ;;  %s685_s23 = int_to_ptr.vmem [resolvable:$true] %s335_s23  ;;  %s511_s5 = int_to_ptr.vmem [resolvable:$false] %s510_s5 }
  0x13   : > { %s506_s30 = scalar_lea.vmem (!%p162_p10), %s685_s23, 512  ;;  %s512_s6 = scalar_lea.vmem (!%p162_p10), %s511_s5, 1024 }
  0x14   : > { %p507_p12 = scmp.ne.s32.totalorder (!%p162_p10), %s685_s23, %s506_s30  ;;  %p513_p1 = scmp.lt.s32.totalorder (!%p162_p10), %s685_s23, %s511_s5 }
  0x15   : > { %221 = vperm.xlu0 (!%p162_p10), %505, %v213_v3   ;;  %p514_p2 = scmp.lt.s32.totalorder (!%p162_p10), %s512_s6, %s506_s30 }
  0x16   : > { %s191_s28 = scalar_select %p190_p11, %s576_s15, 1 }
  0x17   : > { %s692_s15 = scalar_lea.sflag [#allocation3], %s186_s18  ;;  %p508_p13 = pnand %p507_p12, %p651_p4 }
  0x18   : > { %s445_s29 = smul.u32 80, %s191_s28  ;;  %p515_p3 = por %p514_p2, %p513_p1 }
  0x19   : > { %p509_p0 = pneg %p508_p13 }
  0x1a   : > { %s197_s7 = scalar_lea.vmem %s738_s0, %s445_s29  ;;  %s690_s29 = scalar_lea.hbm %s741_s3, %s430_s26 }
  0x1b   : > { %v203_v4 = vld [vmem:[%s197_s7 + $0x8] sm:$0xff]  ;;  %v205_v5 = vld [vmem:[%s197_s7 + $0x18] sm:$0xff]  ;;  %v202_v6 = vld [vmem:[%s197_s7] sm:$0xff]  ;;  %p516_p5 = pnand %p515_p3, %p509_p0 }
  0x1c   : > { %v431_v7 = vpack.c.bf16 %v205_v5, %v203_v4  ;;  %v204_v8 = vld [vmem:[%s197_s7 + $0x10] sm:$0xff]  ;;  %v207_v9 = vld [vmem:[%s197_s7 + $0x28] sm:$0xff]  ;;  %v209_v10 = vld [vmem:[%s197_s7 + $0x38] sm:$0xff] }
  0x1d   : > { %v433_v11 = vpack.c.bf16 %v204_v8, %v202_v6  ;;  %v435_v12 = vpack.c.bf16 %v209_v10, %v207_v9  ;;  %v206_v13 = vld [vmem:[%s197_s7 + $0x20] sm:$0xff]  ;;  %v208_v14 = vld [vmem:[%s197_s7 + $0x30] sm:$0xff]  ;;  %v211_v16 = vld [vmem:[%s197_s7 + $0x48] sm:$0xf] }
  0x1e   : > { %432 = vmatprep.subr.bf16.mxu0 %v431_v7  ;;  %439 = vmatprep.subr.bf16.mxu1 %v431_v7  ;;  %v437_v15 = vpack.c.bf16 %v208_v14, %v206_v13  ;;  %v210_v17 = vld [vmem:[%s197_s7 + $0x40] sm:$0xf] }
  0x1f   : > { %434 = vmatpush1.bf16.msra.mxu0 %v433_v11  ;;  %442 = vmatpush1.bf16.msra.mxu1 %v433_v11 }
  0x20   : > { %436 = vmatprep.subr.bf16.mxu0 %v435_v12  ;;  %440 = vmatprep.subr.bf16.mxu1 %v435_v12 }
  0x23   : > { %438 = vmatpush1.bf16.msra.mxu0 %v437_v15  ;;  %443 = vmatpush1.bf16.msra.mxu1 %v437_v15 }
  0x24   : > { %421 = vmatprep.subr.msk.mxu0 %vm231_vm0, %v211_v16  ;;  %441 = vmatprep.subr.msk.mxu1 %vm231_vm0, %v211_v16 }
  0x27   : > { %422 = vmatpush1.msk.msra.mxu0 %vm231_vm0, %v210_v17  ;;  %444 = vmatpush1.msk.msra.mxu1 %vm231_vm0, %v210_v17 }
  0x28   : > { %423 = vmatmul.mubr.msk.f32.vlgmr.msra.gmra.mrb[0].mxu0 %vm224_vm1, %v200_v18  ;;  %424 = vmatmul.mubr.msk.f32.vlgmr.msra.gmra.mrb[0].mxu1 %vm224_vm1, %v201_v19 }
  0x90   : > { %v217_v20 = vpop.permute.xlu0 %216 }
  0x94   : > { %v222_v21 = vpop.permute.xlu0 %221 }
  0xfb   : > { %v304_v22 = vpop.f32.mrb[0].mxu0  ;;  %v310_v23 = vpop.f32.mrb[0].mxu1 }
  0xfc   : > { %v305_v24 = vadd.f32 %v304_v22, %v217_v20  ;;  %v311_v25 = vadd.f32 %v310_v23, %v222_v21  ;;  %v306_v26 = vpop.f32.mrb[1].mxu0  ;;  %v312_v27 = vpop.f32.mrb[1].mxu1 }
  0xfd   : > { %v307_v28 = vadd.f32 %v306_v26, %v217_v20  ;;  %v313_v29 = vadd.f32 %v312_v27, %v222_v21 }
  0xfe   : > { %315 = vst [vmem:[%s188_s21] sm:$0xff] %v305_v24  ;;  %317 = vst [vmem:[%s188_s21 + $0x10] sm:$0xff] %v311_v25 }
  0xff   : > { %316 = vst [vmem:[%s188_s21 + $0x8] sm:$0xff] %v307_v28  ;;  %318 = vst [vmem:[%s188_s21 + $0x18] sm:$0xff] %v313_v29 }
 0x100   : > { %519 = shalt.err (!%p516_p5)
}
 0x101   : > { %s520_s7 = scalar_lea.hbm %s690_s29, 512  ;;  %s524_s10 = scalar_lea.hbm %s741_s3, 1024 }
 0x102   : > { %p521_p6 = scmp.ne.s32.totalorder %s690_s29, %s520_s7  ;;  %p525_p10 = scmp.lt.u32.totalorder %s690_s29, %s741_s3 }
 0x103   : > { %p526_p11 = scmp.lt.u32.totalorder %s524_s10, %s520_s7  ;;  %p528_p13 = scmp.lt.u32.totalorder %s520_s7, %s690_s29 }
 0x104   : > { %p522_p7 = pnand %p521_p6, %p651_p4 }
 0x105   : > { %p527_p12 = por %p526_p11, %p525_p10 }
 0x106   : > { %p523_p9 = pneg %p522_p7 }
 0x107   : > { %p529_p0 = por %p528_p13, %p527_p12 }
 0x109   : > { %p530_p1 = pnand %p529_p0, %p523_p9 }
 0x10b   : > { %533 = shalt.err (!%p530_p1)
}
 0x10c   : > { %s589_s19 = smov 256   ;;  %s590_s21 = smov 16  }
 0x10d   : > { %446 = dma.vmem_to_hbm [thread:$0]  (%p651_p4), %s685_s23, 512, %s690_s29, %s692_s15, %s589_s19, %s589_s19, %s590_s21  }
 0x10e PF: > { %p452_p2 = scmp.ge.s32.totalorder %s584_s17, 2  ;;  %s350_s26 = sand.u32 1, %s564_s12  }
 0x10f   : > { %s351_s27 = scalar_lea.sflag [#allocation3], %s350_s26 }
 0x110   : > { %p449_p3 = pnand %p452_p2, %p658_p8 }
 0x112   : > { %559 = dma.done.wait (!%p449_p3), %s351_s27, 512  }
 0x113   : > { %561 = vsyncadd (!%p449_p3), %s351_s27, 4294966784  ;;  %s16_s17 = sadd.s32 1, %s584_s17   ;;  %s744_s12 = smov %s568_s13 }
 0x114   : > { %p13_p5 = scmp.ge.s32.totalorder %s16_s17, 4   ;;  %s745_s13 = smov %s572_s14 }
 0x115   : > { %s746_s14 = smov %s664_s25  ;;  %s747_s15 = smov %s580_s16 }
 0x116   : > { %s748_s16 = smov %s750_s20  ;;  %15 = sbr.rel (!%p13_p5) target bundleno = 4 (0x4), region = 67 }
 0x11d   :  { %356 = vsyncpa [#allocation3], 1 }
 0x11e   :  { %358 = vsyncpa [#allocation3 + $0x1], 1 }

</bundles_post_ra>
